<compile_context>
chip_gen: v6e
topology: v6e:2x2x1
jax: 0.10.0
libtpu: 0.0.40
codegen_flags: <defaults>
</compile_context>

<pallas_src>
import math

import jax
import jax.numpy as jnp
from jax.experimental import pallas as pl
from jax.experimental.pallas import tpu as pltpu


# ---------------------------------------------------------------------------
# Kernel
# ---------------------------------------------------------------------------
def _make_flash_attn_kernel(d_head, compute_dtype):
    scale = 1.0 / math.sqrt(d_head)

    def kernel(q_ref, k_ref, v_ref, o_ref, m_sc, l_sc, acc_sc):
        # q_ref/o_ref: (TB, tq, D); k_ref/v_ref: (TB, tk, D) VMEM tiles.
        kv = pl.program_id(2)

        @pl.when(kv == 0)
        def _init():
            m_sc[...] = jnp.full(m_sc.shape, -jnp.inf, dtype=jnp.float32)
            l_sc[...] = jnp.zeros(l_sc.shape, dtype=jnp.float32)
            acc_sc[...] = jnp.zeros(acc_sc.shape, dtype=jnp.float32)

        # Fold 1/sqrt(d_head) into q (tile-sized VPU muls, not scores-sized);
        # scale in the input dtype, then a single cast to the MXU feed dtype.
        q = (q_ref[...] * scale).astype(compute_dtype)
        k = k_ref[...].astype(compute_dtype)
        v = v_ref[...].astype(compute_dtype)

        # scores (TB, tq, tk): contraction on the last dim of both operands,
        # no explicit K transpose (no XLU vxpose), f32 accumulation.
        s = jnp.einsum("bqd,bkd->bqk", q, k, preferred_element_type=jnp.float32)

        # Online (streaming) softmax, all statistics in f32.
        m_prev = m_sc[...]
        m_new = jnp.maximum(m_prev, jnp.max(s, axis=-1, keepdims=True))
        alpha = jnp.exp(m_prev - m_new)
        p = jnp.exp(s - m_new)
        l_sc[...] = alpha * l_sc[...] + jnp.sum(p, axis=-1, keepdims=True)
        acc_sc[...] = alpha * acc_sc[...] + jnp.einsum(
            "bqk,bkd->bqd", p.astype(compute_dtype), v,
            preferred_element_type=jnp.float32,
        )
        m_sc[...] = m_new

        @pl.when(kv == pl.num_programs(2) - 1)
        def _finalize():
            inv_l = pl.reciprocal(l_sc[...], approx=True)
            o_ref[...] = (acc_sc[...] * inv_l).astype(o_ref.dtype)

    return kernel


# ---------------------------------------------------------------------------
# Per-generation sizing
# ---------------------------------------------------------------------------
def _device_defaults():
    """Working-set budget, scoped-VMEM limit, MXU tile target, core count."""
    kind = ""
    try:
        kind = jax.devices()[0].device_kind.lower()
    except Exception:  # pragma: no cover - defensive
        pass

    if "v7" in kind:
        # 64 MiB VMEM per TC, 2 TCs, 2x256^2 MXU.
        return dict(budget=32 << 20, vmem_limit=48 << 20, mxu_tile=256, cores=2)
    if "v6" in kind:
        # 128 MiB VMEM, 2x256^2 MXU -- use the capacity we were leaving idle.
        return dict(budget=64 << 20, vmem_limit=100 << 20, mxu_tile=256, cores=1)
    if "v5" in kind and ("lite" in kind or "v5e" in kind):
        # v5e: 128 MiB physical but 16 MiB scoped default; lift it modestly.
        return dict(budget=14 << 20, vmem_limit=64 << 20, mxu_tile=128, cores=1)
    if "v5" in kind:
        # v5p-class: plenty of VMEM, 128-wide MXU tiles.
        return dict(budget=64 << 20, vmem_limit=100 << 20, mxu_tile=128, cores=1)
    # Unknown / older generation: conservative.
    return dict(budget=12 << 20, vmem_limit=None, mxu_tile=128, cores=1)


def _pad(x, m):
    return ((x + m - 1) // m) * m


def _sublane(itemsize):
    return {4: 8, 2: 16, 1: 32}.get(itemsize, 8)


def _pick_tiles(BH, S, D, itemsize, *, mxu_tile, budget, cores):
    """Pick (TB heads per block, tq, tk) with lane/sublane-padded accounting."""
    sub = _sublane(itemsize)
    d_pad = _pad(D, 128)

    # Seq tile: largest divisor of S that is <= the MXU-friendly target and is
    # either the full S or a sublane multiple ((8,128)-rule on block shapes).
    def seq_tile(target):
        cands = [t for t in range(1, S + 1)
                 if S % t == 0 and t <= target and (t == S or t % sub == 0)]
        return max(cands) if cands else S

    tq = tk = seq_tile(mxu_tile)

    def footprint(tb):
        tq_p = _pad(tq, sub)
        tk_p = _pad(tk, sub)
        # q/o (tq) and k/v (tk) tiles, double-buffered by the pipeline.
        io = 2 * itemsize * tb * (2 * tq_p + 2 * tk_p) * d_pad
        # f32 scratch: m, l pad their size-1 lane dim to 128; acc is (tq, D).
        scr = 4 * tb * (2 * tq_p * 128 + tq_p * d_pad)
        # f32 in-register/VMEM intermediates: scores, probs, exp temporaries.
        inter = 3 * 4 * tb * _pad(tq, 8) * _pad(tk, 128)
        return io + scr + inter

    divisors = [t for t in range(1, BH + 1) if BH % t == 0]
    fitting = [t for t in divisors if footprint(t) <= budget]
    if not fitting:
        fitting = [1]  # flash tiling keeps TB=1 tiny; always compileable.

    tb_max = max(fitting)
    if cores >= 2:
        # v7x: keep the number of "parallel" blocks an even multiple of the
        # core count so neither TensorCore idles.
        good = [t for t in fitting if ((BH // t) * (S // tq)) % cores == 0]
        tb = max(good) if good else tb_max
    else:
        # Single-TC chips: take the largest fitting block, no NB>=2 preference.
        tb = tb_max
    return tb, tq, tk


# ---------------------------------------------------------------------------
# Wrapper
# ---------------------------------------------------------------------------
def scaled_dot_product_attention(q, k, v, *, mxu_bf16=True):
    """q, k, v: (B, H, S, D) -> (B, H, S, D).  Eval-mode, mask=None."""
    B, H, S, D = q.shape
    BH = B * H
    qf = q.reshape(BH, S, D)
    kf = k.reshape(BH, S, D)
    vf = v.reshape(BH, S, D)

    itemsize = jnp.dtype(q.dtype).itemsize
    cfg = _device_defaults()
    TB, tq, tk = _pick_tiles(
        BH, S, D, itemsize,
        mxu_tile=cfg["mxu_tile"], budget=cfg["budget"], cores=cfg["cores"],
    )
    NB = BH // TB
    n_q = S // tq
    n_kv = S // tk

    # f32 callers get bf16 MXU feeds (f32 accumulation, f32 softmax stats).
    compute_dtype = (
        jnp.bfloat16 if (mxu_bf16 and q.dtype == jnp.float32) else q.dtype
    )
    kernel = _make_flash_attn_kernel(D, compute_dtype)

    q_spec = pl.BlockSpec((TB, tq, D), lambda b, qi, ki: (b, qi, 0))
    kv_spec = pl.BlockSpec((TB, tk, D), lambda b, qi, ki: (b, ki, 0))
    o_spec = pl.BlockSpec((TB, tq, D), lambda b, qi, ki: (b, qi, 0))

    out = pl.pallas_call(
        kernel,
        out_shape=jax.ShapeDtypeStruct((BH, S, D), q.dtype),
        grid_spec=pltpu.PrefetchScalarGridSpec(
            num_scalar_prefetch=0,
            grid=(NB, n_q, n_kv),
            in_specs=[q_spec, kv_spec, kv_spec],
            out_specs=o_spec,
            scratch_shapes=[
                pltpu.VMEM((TB, tq, 1), jnp.float32),   # running max m
                pltpu.VMEM((TB, tq, 1), jnp.float32),   # running denom l
                pltpu.VMEM((TB, tq, D), jnp.float32),   # running accumulator
            ],
        ),
        compiler_params=pltpu.CompilerParams(
            dimension_semantics=("parallel", "parallel", "arbitrary"),
            vmem_limit_bytes=cfg["vmem_limit"],
        ),
    )(qf, kf, vf)

    return out.reshape(B, H, S, D)


# ---------------------------------------------------------------------------
# Reference + test
# ---------------------------------------------------------------------------
def _reference(q, k, v):
    d = q.shape[-1]
    s = jnp.einsum("bhqd,bhkd->bhqk", q, k) / math.sqrt(d)
    p = jax.nn.softmax(s, axis=-1)
    return jnp.einsum("bhqk,bhkd->bhqd", p, v)


def _check(B, H, S, D, seed):
    key = jax.random.PRNGKey(seed)
    kq, kk, kv_ = jax.random.split(key, 3)
    q = jax.random.normal(kq, (B, H, S, D), dtype=jnp.float32)
    k = jax.random.normal(kk, (B, H, S, D), dtype=jnp.float32)
    v = jax.random.normal(kv_, (B, H, S, D), dtype=jnp.float32)

    out = jax.block_until_ready(scaled_dot_product_attention(q, k, v))
    ref = _reference(q, k, v)
    assert out.shape == (B, H, S, D)
    # Tolerance covers the bf16 MXU feeds + approx (EUP) reciprocal; softmax
    # statistics and accumulation are kept in f32.
    err = float(jnp.max(jnp.abs(out - ref)))
    assert jnp.allclose(out, ref, atol=3e-2, rtol=3e-2), err


if __name__ == "__main__":
    # Primary small-shape check (d_head = 32), as specified.
    _check(B=2, H=2, S=8, D=32, seed=0)
    # Secondary check exercising the multi-step KV (online softmax) path.
    _check(B=1, H=2, S=512, D=64, seed=0)
    print("KERNEL_OK")
</pallas_src>

<mosaic_0001>
module attributes {stable_mosaic.version = 11 : i64} {
  func.func @kernel(%arg0: i32, %arg1: i32, %arg2: i32, %arg3: memref<4x8x32xf32, #tpu.memory_space<vmem>>, %arg4: memref<4x8x32xf32, #tpu.memory_space<vmem>>, %arg5: memref<4x8x32xf32, #tpu.memory_space<vmem>>, %arg6: memref<4x8x32xf32, #tpu.memory_space<vmem>>, %arg7: memref<4x8x1xf32, #tpu.memory_space<vmem>>, %arg8: memref<4x8x1xf32, #tpu.memory_space<vmem>>, %arg9: memref<4x8x32xf32, #tpu.memory_space<vmem>>) attributes {dimension_semantics = [#tpu.dimension_semantics<parallel>, #tpu.dimension_semantics<parallel>, #tpu.dimension_semantics<arbitrary>], iteration_bounds = array<i64: 1, 1, 1>, scalar_prefetch = 0 : i64, scratch_operands = 3 : i64, tpu.core_type = #tpu.core_type<tc>, window_params = [{transform_indices = @transform_0, window_bounds = array<i64: 4, 8, 32>}, {transform_indices = @transform_1, window_bounds = array<i64: 4, 8, 32>}, {transform_indices = @transform_2, window_bounds = array<i64: 4, 8, 32>}, {transform_indices = @transform_3, window_bounds = array<i64: 4, 8, 32>}]} {
    %c0_i32 = arith.constant 0 : i32
    %0 = arith.cmpi eq, %arg2, %c0_i32 : i32
    %1 = arith.extui %0 : i1 to i32
    %c0_i32_0 = arith.constant 0 : i32
    %2 = arith.cmpi ne, %1, %c0_i32_0 : i32
    scf.if %2 {
      %cst_33 = arith.constant 0xFF800000 : f32
      %38 = vector.broadcast %cst_33 : f32 to vector<4x8x1xf32>
      %c0_34 = arith.constant 0 : index
      %c0_35 = arith.constant 0 : index
      %c0_36 = arith.constant 0 : index
      %39 = vector.load %arg7[%c0_34, %c0_35, %c0_36] : memref<4x8x1xf32, #tpu.memory_space<vmem>>, vector<4x8x1xf32>
      tpu.vector_store %arg7[%c0_34, %c0_35, %c0_36], %38 {strides = array<i32>} : memref<4x8x1xf32, #tpu.memory_space<vmem>>, vector<4x8x1xf32>,
      %cst_37 = arith.constant 0.000000e+00 : f32
      %40 = vector.broadcast %cst_37 : f32 to vector<4x8x1xf32>
      %c0_38 = arith.constant 0 : index
      %c0_39 = arith.constant 0 : index
      %c0_40 = arith.constant 0 : index
      %41 = vector.load %arg8[%c0_38, %c0_39, %c0_40] : memref<4x8x1xf32, #tpu.memory_space<vmem>>, vector<4x8x1xf32>
      tpu.vector_store %arg8[%c0_38, %c0_39, %c0_40], %40 {strides = array<i32>} : memref<4x8x1xf32, #tpu.memory_space<vmem>>, vector<4x8x1xf32>,
      %cst_41 = arith.constant 0.000000e+00 : f32
      %42 = vector.broadcast %cst_41 : f32 to vector<4x8x32xf32>
      %c0_42 = arith.constant 0 : index
      %c0_43 = arith.constant 0 : index
      %c0_44 = arith.constant 0 : index
      %43 = vector.load %arg9[%c0_42, %c0_43, %c0_44] : memref<4x8x32xf32, #tpu.memory_space<vmem>>, vector<4x8x32xf32>
      tpu.vector_store %arg9[%c0_42, %c0_43, %c0_44], %42 {strides = array<i32>} : memref<4x8x32xf32, #tpu.memory_space<vmem>>, vector<4x8x32xf32>,
    } else {
    }
    %c0 = arith.constant 0 : index
    %c0_1 = arith.constant 0 : index
    %c0_2 = arith.constant 0 : index
    %3 = vector.load %arg3[%c0, %c0_1, %c0_2] : memref<4x8x32xf32, #tpu.memory_space<vmem>>, vector<4x8x32xf32>
    %cst = arith.constant 0.176776692 : f32
    %4 = vector.broadcast %cst : f32 to vector<4x8x32xf32>
    %5 = arith.mulf %3, %4 : vector<4x8x32xf32>
    %6 = arith.truncf %5 : vector<4x8x32xf32> to vector<4x8x32xbf16>
    %c0_3 = arith.constant 0 : index
    %c0_4 = arith.constant 0 : index
    %c0_5 = arith.constant 0 : index
    %7 = vector.load %arg4[%c0_3, %c0_4, %c0_5] : memref<4x8x32xf32, #tpu.memory_space<vmem>>, vector<4x8x32xf32>
    %8 = arith.truncf %7 : vector<4x8x32xf32> to vector<4x8x32xbf16>
    %c0_6 = arith.constant 0 : index
    %c0_7 = arith.constant 0 : index
    %c0_8 = arith.constant 0 : index
    %9 = vector.load %arg5[%c0_6, %c0_7, %c0_8] : memref<4x8x32xf32, #tpu.memory_space<vmem>>, vector<4x8x32xf32>
    %10 = arith.truncf %9 : vector<4x8x32xf32> to vector<4x8x32xbf16>
    "tpu.trace_start"() <{level = 10 : i32, message = "bqd,bkd->bqk"}> : () -> ()
    %cst_9 = arith.constant dense<0.000000e+00> : vector<4x8x8xf32>
    %11 = tpu.matmul %6, %8, %cst_9 {dimension_numbers = #tpu.dot_dimension_numbers<[2], [2], [1], [1], [0, 0, 0, 1, 1, 1], [0], [0]>} : vector<4x8x32xbf16>, vector<4x8x32xbf16>, vector<4x8x8xf32> -> vector<4x8x8xf32>
    "tpu.trace_stop"() : () -> ()
    %c0_10 = arith.constant 0 : index
    %c0_11 = arith.constant 0 : index
    %c0_12 = arith.constant 0 : index
    %12 = vector.load %arg7[%c0_10, %c0_11, %c0_12] : memref<4x8x1xf32, #tpu.memory_space<vmem>>, vector<4x8x1xf32>
    %cst_13 = arith.constant dense<0xFF800000> : vector<4x8xf32>
    %13 = vector.multi_reduction <maximumf>, %11, %cst_13 [2] : vector<4x8x8xf32> to vector<4x8xf32>
    %14 = vector.shape_cast %13 : vector<4x8xf32> to vector<4x8x1xf32>
    %15 = arith.maximumf %12, %14 : vector<4x8x1xf32>
    %16 = arith.subf %12, %15 : vector<4x8x1xf32>
    %17 = math.exp %16 : vector<4x8x1xf32>
    %18 = vector.broadcast %15 : vector<4x8x1xf32> to vector<4x8x8xf32>
    %19 = arith.subf %11, %18 : vector<4x8x8xf32>
    %20 = math.exp %19 : vector<4x8x8xf32>
    %c0_14 = arith.constant 0 : index
    %c0_15 = arith.constant 0 : index
    %c0_16 = arith.constant 0 : index
    %21 = vector.load %arg8[%c0_14, %c0_15, %c0_16] : memref<4x8x1xf32, #tpu.memory_space<vmem>>, vector<4x8x1xf32>
    %22 = arith.mulf %17, %21 : vector<4x8x1xf32>
    %cst_17 = arith.constant dense<0.000000e+00> : vector<4x8xf32>
    %23 = vector.multi_reduction <add>, %20, %cst_17 [2] : vector<4x8x8xf32> to vector<4x8xf32>
    %24 = vector.shape_cast %23 : vector<4x8xf32> to vector<4x8x1xf32>
    %25 = arith.addf %22, %24 : vector<4x8x1xf32>
    %c0_18 = arith.constant 0 : index
    %c0_19 = arith.constant 0 : index
    %c0_20 = arith.constant 0 : index
    %26 = vector.load %arg8[%c0_18, %c0_19, %c0_20] : memref<4x8x1xf32, #tpu.memory_space<vmem>>, vector<4x8x1xf32>
    tpu.vector_store %arg8[%c0_18, %c0_19, %c0_20], %25 {strides = array<i32>} : memref<4x8x1xf32, #tpu.memory_space<vmem>>, vector<4x8x1xf32>,
    %c0_21 = arith.constant 0 : index
    %c0_22 = arith.constant 0 : index
    %c0_23 = arith.constant 0 : index
    %27 = vector.load %arg9[%c0_21, %c0_22, %c0_23] : memref<4x8x32xf32, #tpu.memory_space<vmem>>, vector<4x8x32xf32>
    %28 = vector.broadcast %17 : vector<4x8x1xf32> to vector<4x8x32xf32>
    %29 = arith.mulf %28, %27 : vector<4x8x32xf32>
    %30 = arith.truncf %20 : vector<4x8x8xf32> to vector<4x8x8xbf16>
    "tpu.trace_start"() <{level = 10 : i32, message = "bqk,bkd->bqd"}> : () -> ()
    %cst_24 = arith.constant dense<0.000000e+00> : vector<4x8x32xf32>
    %31 = tpu.matmul %30, %10, %cst_24 {dimension_numbers = #tpu.dot_dimension_numbers<[2], [1], [1], [2], [0, 0, 0, 1, 1, 2], [0], [0]>} : vector<4x8x8xbf16>, vector<4x8x32xbf16>, vector<4x8x32xf32> -> vector<4x8x32xf32>
    "tpu.trace_stop"() : () -> ()
    %32 = arith.addf %29, %31 : vector<4x8x32xf32>
    %c0_25 = arith.constant 0 : index
    %c0_26 = arith.constant 0 : index
    %c0_27 = arith.constant 0 : index
    %33 = vector.load %arg9[%c0_25, %c0_26, %c0_27] : memref<4x8x32xf32, #tpu.memory_space<vmem>>, vector<4x8x32xf32>
    tpu.vector_store %arg9[%c0_25, %c0_26, %c0_27], %32 {strides = array<i32>} : memref<4x8x32xf32, #tpu.memory_space<vmem>>, vector<4x8x32xf32>,
    %c0_28 = arith.constant 0 : index
    %c0_29 = arith.constant 0 : index
    %c0_30 = arith.constant 0 : index
    %34 = vector.load %arg7[%c0_28, %c0_29, %c0_30] : memref<4x8x1xf32, #tpu.memory_space<vmem>>, vector<4x8x1xf32>
    tpu.vector_store %arg7[%c0_28, %c0_29, %c0_30], %15 {strides = array<i32>} : memref<4x8x1xf32, #tpu.memory_space<vmem>>, vector<4x8x1xf32>,
    %c0_i32_31 = arith.constant 0 : i32
    %35 = arith.cmpi eq, %arg2, %c0_i32_31 : i32
    %36 = arith.extui %35 : i1 to i32
    %c0_i32_32 = arith.constant 0 : i32
    %37 = arith.cmpi ne, %36, %c0_i32_32 : i32
    scf.if %37 {
      %c0_33 = arith.constant 0 : index
      %c0_34 = arith.constant 0 : index
      %c0_35 = arith.constant 0 : index
      %38 = vector.load %arg8[%c0_33, %c0_34, %c0_35] : memref<4x8x1xf32, #tpu.memory_space<vmem>>, vector<4x8x1xf32>
      %39 = tpu.reciprocal %38 {approx = true} : vector<4x8x1xf32> -> vector<4x8x1xf32>
      %c0_36 = arith.constant 0 : index
      %c0_37 = arith.constant 0 : index
      %c0_38 = arith.constant 0 : index
      %40 = vector.load %arg9[%c0_36, %c0_37, %c0_38] : memref<4x8x32xf32, #tpu.memory_space<vmem>>, vector<4x8x32xf32>
      %41 = vector.broadcast %39 : vector<4x8x1xf32> to vector<4x8x32xf32>
      %42 = arith.mulf %40, %41 : vector<4x8x32xf32>
      %c0_39 = arith.constant 0 : index
      %c0_40 = arith.constant 0 : index
      %c0_41 = arith.constant 0 : index
      %43 = vector.load %arg6[%c0_39, %c0_40, %c0_41] : memref<4x8x32xf32, #tpu.memory_space<vmem>>, vector<4x8x32xf32>
      tpu.vector_store %arg6[%c0_39, %c0_40, %c0_41], %42 {strides = array<i32>} : memref<4x8x32xf32, #tpu.memory_space<vmem>>, vector<4x8x32xf32>,
    } else {
    }
    return
  }
  func.func @transform_0(%arg0: i32, %arg1: i32, %arg2: i32) -> (i32, i32, i32) {
    %c0_i32 = arith.constant 0 : i32
    %c0_i32_0 = arith.constant 0 : i32
    return %arg0, %arg1, %c0_i32 : i32, i32, i32
  }
  func.func @transform_1(%arg0: i32, %arg1: i32, %arg2: i32) -> (i32, i32, i32) {
    %c0_i32 = arith.constant 0 : i32
    %c0_i32_0 = arith.constant 0 : i32
    return %arg0, %arg2, %c0_i32 : i32, i32, i32
  }
  func.func @transform_2(%arg0: i32, %arg1: i32, %arg2: i32) -> (i32, i32, i32) {
    %c0_i32 = arith.constant 0 : i32
    %c0_i32_0 = arith.constant 0 : i32
    return %arg0, %arg2, %c0_i32 : i32, i32, i32
  }
  func.func @transform_3(%arg0: i32, %arg1: i32, %arg2: i32) -> (i32, i32, i32) {
    %c0_i32 = arith.constant 0 : i32
    %c0_i32_0 = arith.constant 0 : i32
    return %arg0, %arg1, %c0_i32 : i32, i32, i32
  }
}

</mosaic_0001>

<bundles_post_ra>
// kernel: tpu_custom_call.1
= control target key start
LH: loop header
LB: loop body
LE: loop exit
PB: predicated region body
PF: predicated region fallthrough
CT: control target
= control target key end

     0   :  { %8 = vsyncpa [#allocation6], 0  ;;  %s1061_s0 = inlined_call_operand.hbm [shape: f32[4,8,32], index: 0, kind: input, shape index: {}]   ;;  %s1062_s1 = inlined_call_operand.hbm [shape: f32[4,8,32], index: 1, kind: input, shape index: {}]   ;;  %s1063_s2 = inlined_call_operand.hbm [shape: f32[4,8,32], index: 2, kind: input, shape index: {}]   ;;  %s1064_s3 = inlined_call_operand.hbm [shape: f32[4,8,32], index: 3, kind: output, shape index: {}]  }
   0x1   :  { %9 = vsyncpa [#allocation9], 0 }
   0x2   :  { %10 = vsyncpa [#allocation7], 0  ;;  %s866_s12 = smov [#allocation8]   ;;  %s867_s14 = smov [#allocation5]  }
   0x3   :  { %s28_s13 = sshll.u32 %s866_s12, 4  ;;  %s16_s15 = sshll.u32 %s867_s14, 4  ;;  %s29_s13 = int_to_ptr.vmem [resolvable:$true] %s28_s13  ;;  %s17_s15 = int_to_ptr.vmem [resolvable:$true] %s16_s15 }
   0x4   :  { %s788_s16 = scalar_lea.vmem %s29_s13, 512  ;;  %p793_p1 = scmp.lt.s32.totalorder %s29_s13, %s29_s13 }
   0x5   :  { %p789_p0 = scmp.ne.s32.totalorder %s29_s13, %s788_s16  ;;  %p794_p2 = scmp.lt.s32.totalorder %s788_s16, %s788_s16 }
   0x7   :  { %p795_p3 = por %p794_p2, %p793_p1 }
   0x9   :  { %p796_p4 = pnand %p795_p3, %p789_p0 }
   0xb   :  { %799 = shalt.err (!%p796_p4)
}
   0xc   :  { %s868_s17 = smov 128   ;;  %s869_s18 = smov 8  }
   0xd   :  { %34 = dma.hbm_to_vmem [thread:$0]  %s1062_s1, 512, %s29_s13, [#allocation9], %s868_s17, %s868_s17, %s869_s18  }
   0xe   :  { %s808_s21 = scalar_lea.vmem %s17_s15, 512  ;;  %p813_p6 = scmp.lt.s32.totalorder %s17_s15, %s17_s15 }
   0xf   :  { %p809_p5 = scmp.ne.s32.totalorder %s17_s15, %s808_s21  ;;  %p814_p7 = scmp.lt.s32.totalorder %s808_s21, %s808_s21 }
  0x11   :  { %p815_p8 = por %p814_p7, %p813_p6 }
  0x13   :  { %p816_p9 = pnand %p815_p8, %p809_p5 }
  0x15   :  { %819 = shalt.err (!%p816_p9)
}
  0x16   :  { %22 = dma.hbm_to_vmem [thread:$0]  %s1061_s0, 512, %s17_s15, [#allocation6], %s868_s17, %s868_s17, %s869_s18  }
  0x17   :  { %s870_s24 = smov [#allocation10]  }
  0x18   :  { %s40_s25 = sshll.u32 %s870_s24, 4  ;;  %s41_s25 = int_to_ptr.vmem [resolvable:$true] %s40_s25 }
  0x19   :  { %s828_s26 = scalar_lea.vmem %s41_s25, 512  ;;  %p833_p11 = scmp.lt.s32.totalorder %s41_s25, %s41_s25 }
  0x1a   :  { %p829_p10 = scmp.ne.s32.totalorder %s41_s25, %s828_s26  ;;  %p834_p12 = scmp.lt.s32.totalorder %s828_s26, %s828_s26 }
  0x1c   :  { %p835_p13 = por %p834_p12, %p833_p11 }
  0x1e   :  { %p836_p0 = pnand %p835_p13, %p829_p10 }
  0x20   :  { %839 = shalt.err (!%p836_p0)
}
  0x21   :  { %46 = dma.hbm_to_vmem [thread:$0]  %s1063_s2, 512, %s41_s25, [#allocation9], %s868_s17, %s868_s17, %s869_s18  }
  0x22   :  { %860 = dma.done.wait [#allocation6], 512  }
  0x23   :  { %861 = vsyncadd [#allocation6], 4294966784 }
  0x24   :  { %862 = dma.done.wait [#allocation9], 1024  }
  0x25   :  { %863 = vsyncadd [#allocation9], 4294966272  ;;  %vm70_vm0 = vcmask 261120   ;;  %v871_v0 = vmov 0.0   ;;  %vm872_vm1 = vmmov 0   ;;  %v87_v1 = vld [vmem:[#allocation8] sm:$0xff] }
  0x26   :  { %696 = vmatprep.subr.bf16.mxu0 %v871_v0  ;;  %702 = vmatprep.subr.bf16.mxu1 %v871_v0  ;;  %71 = vst.msk [vmem:[#allocation4] sm:$0xff] %vm70_vm0, %v871_v0  ;;  %72 = vst.msk [vmem:[#allocation4 + $0x8] sm:$0xff] %vm70_vm0, %v871_v0  ;;  %v88_v2 = vld [vmem:[#allocation8 + $0x8] sm:$0xff]  ;;  %v75_v3 = vld [vmem:[#allocation5] sm:$0xff]  ;;  %v91_v4 = vpack.c.bf16 %v87_v1, %v87_v1  ;;  %vm61_vm2 = vcmask 7168   ;;  %v873_v25 = vmov -inf  }
  0x27   :  { %73 = vst.msk [vmem:[#allocation4 + $0x10] sm:$0xff] %vm70_vm0, %v871_v0  ;;  %74 = vst.msk [vmem:[#allocation4 + $0x18] sm:$0xff] %vm70_vm0, %v871_v0  ;;  %698 = vmatprep.mubr.msk.bf16.mxu0 %vm872_vm1, %v871_v0  ;;  %704 = vmatprep.mubr.msk.bf16.mxu1 %vm872_vm1, %v871_v0  ;;  %v92_v5 = vpack.c.bf16 %v88_v2, %v88_v2  ;;  %v76_v6 = vld [vmem:[#allocation5 + $0x8] sm:$0xff]  ;;  %v89_v7 = vld [vmem:[#allocation8 + $0x10] sm:$0xff]  ;;  %v79_v11 = vmul.f32 0.17677669, %v75_v3 }
  0x28   :  { %v90_v8 = vld [vmem:[#allocation8 + $0x18] sm:$0xff]  ;;  %v108_v9 = vsel %vm70_vm0, %v91_v4, 0  ;;  %v80_v12 = vmul.f32 0.17677669, %v76_v6  ;;  %v93_v13 = vpack.c.bf16 %v89_v7, %v89_v7  ;;  %v77_v17 = vld [vmem:[#allocation5 + $0x10] sm:$0xff]  ;;  %62 = vst.msk [vmem:[#allocation2] sm:$0xff] %vm61_vm2, %v873_v25 }
  0x29   :  { %v154_v10 = vsel %vm70_vm0, %v92_v5, 0  ;;  %697 = vmatpush3.bf16.xpose.msra.mxu0 %v108_v9  ;;  %v94_v14 = vpack.c.bf16 %v90_v8, %v90_v8  ;;  %v83_v15 = vpack.c.bf16 %v79_v11, %v79_v11  ;;  %v78_v18 = vld [vmem:[#allocation5 + $0x18] sm:$0xff]  ;;  %v81_v21 = vmul.f32 0.17677669, %v77_v17  ;;  %63 = vst.msk [vmem:[#allocation2 + $0x8] sm:$0xff] %vm61_vm2, %v873_v25  ;;  %64 = vst.msk [vmem:[#allocation2 + $0x10] sm:$0xff] %vm61_vm2, %v873_v25 }
  0x2a   :  { %703 = vmatpush3.bf16.xpose.msra.mxu1 %v154_v10  ;;  %708 = vmatprep.subr.bf16.mxu0 %v871_v0  ;;  %v84_v16 = vpack.c.bf16 %v80_v12, %v80_v12  ;;  %v200_v19 = vsel %vm70_vm0, %v93_v13, 0  ;;  %v82_v22 = vmul.f32 0.17677669, %v78_v18  ;;  %65 = vst.msk [vmem:[#allocation2 + $0x18] sm:$0xff] %vm61_vm2, %v873_v25  ;;  %66 = vst.msk [vmem:[#allocation3] sm:$0xff] %vm61_vm2, %v871_v0  ;;  %vm292_vm3 = vcmask 64512  }
  0x2b   :  { %714 = vmatprep.subr.bf16.mxu1 %v871_v0  ;;  %v246_v20 = vsel %vm70_vm0, %v94_v14, 0  ;;  %v85_v23 = vpack.c.bf16 %v81_v21, %v81_v21  ;;  %67 = vst.msk [vmem:[#allocation3 + $0x8] sm:$0xff] %vm61_vm2, %v871_v0  ;;  %68 = vst.msk [vmem:[#allocation3 + $0x10] sm:$0xff] %vm61_vm2, %v871_v0  ;;  %v874_v44 = vmov 0   ;;  %v95_v61 = vld [vmem:[#allocation10] sm:$0xff]  ;;  %vm417_vm4 = vcmask 1043456  }
  0x2c   :  { %v86_v24 = vpack.c.bf16 %v82_v22, %v82_v22  ;;  %69 = vst.msk [vmem:[#allocation3 + $0x18] sm:$0xff] %vm61_vm2, %v871_v0  ;;  %754 = vset.pattern.permute.xlu0 %v874_v44  ;;  %755 = vset.pattern.permute.xlu1 %v874_v44  ;;  %v99_v63 = vpack.c.bf16 %v95_v61, %v95_v61  ;;  %v96_v3 = vld [vmem:[#allocation10 + $0x8] sm:$0xff]  ;;  %s875_s0 = smov [#allocation11]  }
  0x2d   :  { %v100_v4 = vpack.c.bf16 %v96_v3, %v96_v3  ;;  %s659_s2 = sshll.u32 %s875_s0, 4  ;;  %s660_s2 = int_to_ptr.vmem [resolvable:$true] %s659_s2 }
  0x2e   :  { %v419_v2 = vsel %vm417_vm4, %v99_v63, 0  ;;  %s840_s28 = scalar_lea.vmem %s660_s2, 512  ;;  %p845_p2 = scmp.lt.s32.totalorder %s660_s2, %s660_s2 }
  0x2f   :  { %v973_v47 = vld [vmem:[#allocation2] sm:$0xff]  ;;  %v465_v5 = vsel %vm417_vm4, %v100_v4, 0  ;;  %p841_p1 = scmp.ne.s32.totalorder %s660_s2, %s840_s28  ;;  %p846_p3 = scmp.lt.s32.totalorder %s840_s28, %s840_s28 }
  0x30   :  { %699 = vmatmul.mubr.msk.bf16.vlgmr.msra.gmra.mxu0 %vm70_vm0, %v83_v15  ;;  %v978_v50 = vld [vmem:[#allocation2 + $0x8] sm:$0xff]  ;;  %v988_v54 = vld [vmem:[#allocation2 + $0x10] sm:$0xff] }
  0x31   :  { %705 = vmatmul.mubr.msk.bf16.vlgmr.msra.gmra.mxu1 %vm70_vm0, %v84_v16  ;;  %709 = vmatpush3.bf16.xpose.msra.mxu0 %v200_v19  ;;  %v998_v58 = vld [vmem:[#allocation2 + $0x18] sm:$0xff]  ;;  %v97_v16 = vld [vmem:[#allocation10 + $0x10] sm:$0xff]  ;;  %p847_p4 = por %p846_p3, %p845_p2 }
  0x32   :  { %715 = vmatpush3.bf16.xpose.msra.mxu1 %v246_v20  ;;  %710 = vmatprep.mubr.msk.bf16.mxu0 %vm872_vm1, %v871_v0  ;;  %v101_v19 = vpack.c.bf16 %v97_v16, %v97_v16  ;;  %v98_v20 = vld [vmem:[#allocation10 + $0x18] sm:$0xff] }
  0x33   :  { %716 = vmatprep.mubr.msk.bf16.mxu1 %vm872_vm1, %v871_v0  ;;  %720 = vmatprep.subr.bf16.mxu0 %v871_v0  ;;  %v102_v25 = vpack.c.bf16 %v98_v20, %v98_v20  ;;  %p848_p5 = pnand %p847_p4, %p841_p1 }
  0x34   :  { %726 = vmatprep.subr.bf16.mxu1 %v871_v0 }
  0x38   :  { %711 = vmatmul.mubr.msk.bf16.vlgmr.msra.gmra.mxu0 %vm70_vm0, %v85_v23 }
  0x39   :  { %717 = vmatmul.mubr.msk.bf16.vlgmr.msra.gmra.mxu1 %vm70_vm0, %v86_v24  ;;  %722 = vmatprep.mubr.msk.bf16.mxu0 %vm872_vm1, %v871_v0  ;;  %v511_v24 = vsel %vm417_vm4, %v101_v19, 0 }
  0x3a   :  { %728 = vmatprep.mubr.msk.bf16.mxu1 %vm872_vm1, %v871_v0  ;;  %721 = vmatpush3.bf16.msra.mxu0 %v419_v2 }
  0x3b   :  { %732 = vmatprep.subr.bf16.mxu0 %v871_v0  ;;  %727 = vmatpush3.bf16.msra.mxu1 %v465_v5  ;;  %v382_v5 = vld [vmem:[#allocation4] sm:$0xff] }
  0x3c   :  { %738 = vmatprep.subr.bf16.mxu1 %v871_v0 }
  0xf0   :  { %v960_v26 = vpop.f32.mrf.mxu0 }
  0xf1   :  { %v962_v27 = vpop.f32.mrf.mxu1  ;;  %v293_v28 = vsel %vm292_vm3, %v960_v26, -inf }
  0xf2   :  { %294 = vmax.xlane.f32.xlu0 %v293_v28  ;;  %v700_v30 = vpop.f32.mrf.mxu0  ;;  %v296_v31 = vsel %vm292_vm3, %v962_v27, -inf }
  0xf3   :  { %v706_v29 = vpop.f32.mrf.mxu1 }
  0xf4   :  { %v147_v32 = vpop.f32.mrf.mxu0  ;;  %v557_v29 = vsel %vm417_vm4, %v102_v25, 0 }
  0xf5   :  { %v193_v33 = vpop.f32.mrf.mxu1 }
  0xf6   :  { %297 = vmax.xlane.f32.xlu0 %v296_v31  ;;  %v701_v35 = vpop.f32.mrf.mxu0 }
  0xf7   :  { %v707_v34 = vpop.f32.mrf.mxu1 }
  0xf8   :  { %v236_v36 = vpop.f32.mrf.mxu0 }
  0xf9   :  { %v968_v37 = vpop.f32.mrf.mxu1  ;;  %v299_v38 = vsel %vm292_vm3, %v236_v36, -inf }
  0xfa   :  { %300 = vmax.xlane.f32.xlu1 %v299_v38  ;;  %v712_v40 = vpop.f32.mrf.mxu0  ;;  %v302_v41 = vsel %vm292_vm3, %v968_v37, -inf }
  0xfb   :  { %v718_v39 = vpop.f32.mrf.mxu1 }
  0xfc   :  { %v239_v42 = vpop.f32.mrf.mxu0 }
  0xfd   :  { %v285_v43 = vpop.f32.mrf.mxu1 }
  0xfe   :  { %303 = vmax.xlane.f32.xlu1 %v302_v41  ;;  %v713_v46 = vpop.f32.mrf.mxu0  ;;  %v353_v43 = vld [vmem:[#allocation3] sm:$0xff] }
  0xff   :  { %v719_v45 = vpop.f32.mrf.mxu1  ;;  %v354_v46 = vld [vmem:[#allocation3 + $0x8] sm:$0xff] }
 0x17b   :  { %v295_v48 = vpop.xlane.xlu0 %294 }
 0x17c   :  { %v976_v49 = vmax.f32 %v973_v47, %v295_v48 }
 0x17e   :  { %v309_v51 = vsub.f32 %v973_v47, %v976_v49  ;;  %607 = vst.msk [vmem:[#allocation2] sm:$0xff] %vm61_vm2, %v976_v49  ;;  %323 = vperm.xlu0 %754, %v976_v49  }
 0x17f   :  { %v298_v52 = vpop.xlane.xlu0 %297 }
 0x180   :  { %v986_v53 = vmax.f32 %v978_v50, %v298_v52  ;;  %v313_v35 = vmul.f32 1.442695, %v309_v51 }
 0x182   :  { %v310_v55 = vsub.f32 %v978_v50, %v986_v53  ;;  %608 = vst.msk [vmem:[#allocation2 + $0x8] sm:$0xff] %vm61_vm2, %v986_v53  ;;  %328 = vperm.xlu1 %755, %v986_v53   ;;  %v355_v50 = vld [vmem:[#allocation3 + $0x10] sm:$0xff] }
 0x183   :  { %v301_v56 = vpop.xlane.xlu1 %300 }
 0x184   :  { %v996_v57 = vmax.f32 %v988_v54, %v301_v56  ;;  %v315_v33 = vmul.f32 1.442695, %v310_v55 }
 0x186   :  { %v311_v59 = vsub.f32 %v988_v54, %v996_v57  ;;  %609 = vst.msk [vmem:[#allocation2 + $0x10] sm:$0xff] %vm61_vm2, %v996_v57  ;;  %333 = vperm.xlu1 %755, %v996_v57   ;;  %v356_v54 = vld [vmem:[#allocation3 + $0x18] sm:$0xff] }
 0x187   :  { %v304_v60 = vpop.xlane.xlu1 %303 }
 0x188   :  { %v1006_v62 = vmax.f32 %v998_v58, %v304_v60 }
 0x18a   :  { %v312_v1 = vsub.f32 %v998_v58, %v1006_v62  ;;  %610 = vst.msk [vmem:[#allocation2 + $0x18] sm:$0xff] %vm61_vm2, %v1006_v62  ;;  %338 = vperm.xlu1 %755, %v1006_v62  }
 0x18c   :  { %v319_v38 = vmul.f32 1.442695, %v312_v1 }
 0x1f9   :  { %v324_v6 = vpop.permute.xlu0 %323 }
 0x1fa   :  { %v341_v7 = vsub.f32 %v960_v26, %v324_v6 }
 0x1fc   :  { %v345_v8 = vmul.f32 1.442695, %v341_v7  ;;  %v383_v7 = vld [vmem:[#allocation4 + $0x8] sm:$0xff] }
 0x1fd   :  { %v329_v9 = vpop.permute.xlu1 %328 }
 0x1fe   :  { %756 = vpow2.f32 %v345_v8  ;;  %v342_v10 = vsub.f32 %v962_v27, %v329_v9 }
 0x200   :  { %v347_v11 = vmul.f32 1.442695, %v342_v10 }
 0x201   :  { %v334_v12 = vpop.permute.xlu1 %333 }
 0x202   :  { %758 = vpow2.f32 %v347_v11  ;;  %v343_v13 = vsub.f32 %v236_v36, %v334_v12 }
 0x204   :  { %v349_v14 = vmul.f32 1.442695, %v343_v13 }
 0x205   :  { %v339_v15 = vpop.permute.xlu1 %338 }
 0x206   :  { %760 = vpow2.f32 %v349_v14  ;;  %v344_v17 = vsub.f32 %v968_v37, %v339_v15  ;;  %v384_v14 = vld [vmem:[#allocation4 + $0x10] sm:$0xff] }
 0x208   :  { %v351_v18 = vmul.f32 1.442695, %v344_v17 }
 0x20a   :  { %762 = vpow2.f32 %v351_v18 }
 0x20b   :  { %v757_v21 = vpop.eup %756  ;;  %764 = vpow2.f32 %v315_v33 }
 0x20c   :  { %v361_v22 = vsel %vm292_vm3, %v757_v21, 0.0  ;;  %v410_v23 = vpack.c.bf16 %v757_v21, %v757_v21  ;;  %766 = vpow2.f32 %v313_v35 }
 0x20d   :  { %362 = vadd.xlane.f32.xlu1 %v361_v22  ;;  %v385_v22 = vld [vmem:[#allocation4 + $0x18] sm:$0xff] }
 0x20e   :  { %723 = vmatmul.mubr.msk.bf16.vlgmr.msra.gmra.mxu0 %vm292_vm3, %v410_v23 }
 0x20f   :  { %v759_v26 = vpop.eup %758  ;;  %733 = vmatpush3.bf16.msra.mxu0 %v511_v24  ;;  %734 = vmatprep.mubr.msk.bf16.mxu0 %vm872_vm1, %v871_v0 }
 0x210   :  { %v364_v27 = vsel %vm292_vm3, %v759_v26, 0.0  ;;  %v411_v28 = vpack.c.bf16 %v759_v26, %v759_v26 }
 0x211   :  { %365 = vadd.xlane.f32.xlu0 %v364_v27 }
 0x212   :  { %729 = vmatmul.mubr.msk.bf16.vlgmr.msra.gmra.mxu1 %vm292_vm3, %v411_v28 }
 0x213   :  { %v761_v30 = vpop.eup %760  ;;  %739 = vmatpush3.bf16.msra.mxu1 %v557_v29  ;;  %740 = vmatprep.mubr.msk.bf16.mxu1 %vm872_vm1, %v871_v0  ;;  %v317_v0 = vmul.f32 1.442695, %v311_v59 }
 0x214   :  { %v367_v31 = vsel %vm292_vm3, %v761_v30, 0.0  ;;  %v412_v32 = vpack.c.bf16 %v761_v30, %v761_v30 }
 0x215   :  { %368 = vadd.xlane.f32.xlu1 %v367_v31  ;;  %768 = vpow2.f32 %v317_v0 }
 0x216   :  { %735 = vmatmul.mubr.msk.bf16.vlgmr.msra.gmra.mxu0 %vm292_vm3, %v412_v32  ;;  %770 = vpow2.f32 %v319_v38 }
 0x217   :  { %v763_v34 = vpop.eup %762 }
 0x218   :  { %v370_v36 = vsel %vm292_vm3, %v763_v34, 0.0  ;;  %v413_v37 = vpack.c.bf16 %v763_v34, %v763_v34  ;;  %v765_v39 = vpop.eup %764 }
 0x219   :  { %371 = vadd.xlane.f32.xlu1 %v370_v36  ;;  %v767_v40 = vpop.eup %766  ;;  %v358_v48 = vmul.f32 %v765_v39, %v354_v46 }
 0x21a   :  { %741 = vmatmul.mubr.msk.bf16.vlgmr.msra.gmra.mxu1 %vm292_vm3, %v413_v37  ;;  %v357_v44 = vmul.f32 %v767_v40, %v353_v43 }
 0x222   :  { %v769_v41 = vpop.eup %768 }
 0x223   :  { %v771_v42 = vpop.eup %770  ;;  %v359_v52 = vmul.f32 %v769_v41, %v355_v50 }
 0x224   :  { %v360_v57 = vmul.f32 %v771_v42, %v356_v54 }
 0x227   :  { %393 = vperm.xlu0 %754, %v765_v39  }
 0x22a   :  { %388 = vperm.xlu1 %755, %v767_v40  }
 0x22e   :  { %398 = vperm.xlu1 %755, %v769_v41  }
 0x232   :  { %403 = vperm.xlu1 %755, %v771_v42  }
 0x296   :  { %v363_v45 = vpop.xlane.xlu1 %362 }
 0x297   :  { %v373_v47 = vadd.f32 %v363_v45, %v357_v44 }
 0x299   :  { %378 = vst.msk [vmem:[#allocation3] sm:$0xff] %vm61_vm2, %v373_v47 }
 0x29a   :  { %v366_v49 = vpop.xlane.xlu0 %365 }
 0x29b   :  { %v374_v51 = vadd.f32 %v366_v49, %v358_v48 }
 0x29d   :  { %379 = vst.msk [vmem:[#allocation3 + $0x8] sm:$0xff] %vm61_vm2, %v374_v51 }
 0x29e   :  { %v369_v53 = vpop.xlane.xlu1 %368 }
 0x29f   :  { %v375_v55 = vadd.f32 %v369_v53, %v359_v52 }
 0x2a0   :  { %v614_v56 = vld [vmem:[#allocation3] sm:$0xff] }
 0x2a1   :  { %380 = vst.msk [vmem:[#allocation3 + $0x10] sm:$0xff] %vm61_vm2, %v375_v55  ;;  %772 = vrcp.f32 %v614_v56 }
 0x2a2   :  { %v372_v58 = vpop.xlane.xlu1 %371  ;;  %v394_v8 = vpop.permute.xlu0 %393 }
 0x2a3   :  { %v376_v59 = vadd.f32 %v372_v58, %v360_v57  ;;  %v407_v13 = vmul.f32 %v394_v8, %v383_v7 }
 0x2a4   :  { %v615_v60 = vld [vmem:[#allocation3 + $0x8] sm:$0xff] }
 0x2a5   :  { %381 = vst.msk [vmem:[#allocation3 + $0x18] sm:$0xff] %vm61_vm2, %v376_v59  ;;  %774 = vrcp.f32 %v615_v60 }
 0x2a6   :  { %v389_v4 = vpop.permute.xlu1 %388 }
 0x2a7   :  { %v406_v6 = vmul.f32 %v389_v4, %v382_v5 }
 0x2a8   :  { %v616_v61 = vld [vmem:[#allocation3 + $0x10] sm:$0xff] }
 0x2a9   :  { %776 = vrcp.f32 %v616_v61 }
 0x2aa   :  { %v399_v10 = vpop.permute.xlu1 %398 }
 0x2ab   :  { %v408_v20 = vmul.f32 %v399_v10, %v384_v14 }
 0x2ac   :  { %v617_v62 = vld [vmem:[#allocation3 + $0x18] sm:$0xff] }
 0x2ad   :  { %778 = vrcp.f32 %v617_v62 }
 0x2ae   :  { %v773_v63 = vpop.eup %772  ;;  %v404_v21 = vpop.permute.xlu1 %403 }
 0x2af   :  { %628 = vperm.xlu1 %755, %v773_v63   ;;  %v409_v28 = vmul.f32 %v404_v21, %v385_v22 }
 0x2b2   :  { %v775_v1 = vpop.eup %774 }
 0x2b3   :  { %633 = vperm.xlu0 %754, %v775_v1  }
 0x2b6   :  { %v777_v2 = vpop.eup %776 }
 0x2b7   :  { %638 = vperm.xlu1 %755, %v777_v2  }
 0x2ba   :  { %v779_v3 = vpop.eup %778 }
 0x2bb   :  { %643 = vperm.xlu0 %754, %v779_v3  }
 0x2ce   :  { %v455_v9 = vpop.f32.mrf.mxu0 }
 0x2cf   :  { %v599_v11 = vadd.f32 %v455_v9, %v406_v6 }
 0x2d0   :  { %v724_v12 = vpop.f32.mrf.mxu0 }
 0x2d1   :  { %603 = vst.msk [vmem:[#allocation4] sm:$0xff] %vm70_vm0, %v599_v11 }
 0x2d2   :  { %v458_v15 = vpop.f32.mrf.mxu0  ;;  %v501_v16 = vpop.f32.mrf.mxu1 }
 0x2d3   :  { %v600_v17 = vadd.f32 %v501_v16, %v407_v13 }
 0x2d4   :  { %v725_v18 = vpop.f32.mrf.mxu0  ;;  %v730_v19 = vpop.f32.mrf.mxu1 }
 0x2d5   :  { %604 = vst.msk [vmem:[#allocation4 + $0x8] sm:$0xff] %vm70_vm0, %v600_v17 }
 0x2d6   :  { %v504_v23 = vpop.f32.mrf.mxu1  ;;  %v547_v24 = vpop.f32.mrf.mxu0 }
 0x2d7   :  { %v601_v25 = vadd.f32 %v547_v24, %v408_v20 }
 0x2d8   :  { %v731_v26 = vpop.f32.mrf.mxu1  ;;  %v736_v27 = vpop.f32.mrf.mxu0  ;;  %v622_v36 = vld [vmem:[#allocation4] sm:$0xff] }
 0x2d9   :  { %605 = vst.msk [vmem:[#allocation4 + $0x10] sm:$0xff] %vm70_vm0, %v601_v25 }
 0x2da   :  { %v550_v29 = vpop.f32.mrf.mxu0  ;;  %v593_v30 = vpop.f32.mrf.mxu1 }
 0x2db   :  { %v602_v31 = vadd.f32 %v593_v30, %v409_v28 }
 0x2dc   :  { %v737_v32 = vpop.f32.mrf.mxu0  ;;  %v742_v33 = vpop.f32.mrf.mxu1  ;;  %v623_v38 = vld [vmem:[#allocation4 + $0x8] sm:$0xff] }
 0x2dd   :  { %606 = vst.msk [vmem:[#allocation4 + $0x18] sm:$0xff] %vm70_vm0, %v602_v31 }
 0x2de   :  { %v596_v34 = vpop.f32.mrf.mxu1 }
 0x2e0   :  { %v743_v35 = vpop.f32.mrf.mxu1  ;;  %v624_v41 = vld [vmem:[#allocation4 + $0x10] sm:$0xff] }
 0x2e4   :  { %v625_v45 = vld [vmem:[#allocation4 + $0x18] sm:$0xff] }
 0x32a   :  { %v629_v37 = vpop.permute.xlu1 %628 }
 0x32b   :  { %v646_v0 = vmul.f32 %v629_v37, %v622_v36 }
 0x32d   :  { %650 = vst.msk [vmem:[#allocation11] sm:$0xff] %vm70_vm0, %v646_v0 }
 0x32e   :  { %v634_v39 = vpop.permute.xlu0 %633 }
 0x32f   :  { %v647_v40 = vmul.f32 %v634_v39, %v623_v38 }
 0x331   :  { %651 = vst.msk [vmem:[#allocation11 + $0x8] sm:$0xff] %vm70_vm0, %v647_v40 }
 0x332   :  { %v639_v42 = vpop.permute.xlu1 %638 }
 0x333   :  { %v648_v43 = vmul.f32 %v639_v42, %v624_v41 }
 0x335   :  { %652 = vst.msk [vmem:[#allocation11 + $0x10] sm:$0xff] %vm70_vm0, %v648_v43 }
 0x336   :  { %v644_v44 = vpop.permute.xlu0 %643 }
 0x337   :  { %v649_v46 = vmul.f32 %v644_v44, %v625_v45 }
 0x339   :  { %653 = vst.msk [vmem:[#allocation11 + $0x18] sm:$0xff] %vm70_vm0, %v649_v46 }
 0x33a   :  { %851 = shalt.err (!%p848_p5)
}
 0x33b   :  { %665 = dma.vmem_to_hbm [thread:$0]  %s660_s2, 512, %s1064_s3, [#allocation7], %s868_s17, %s868_s17, %s869_s18  }
 0x33c   :  { %864 = dma.done.wait [#allocation7], 512  }
 0x33d   :  { %865 = vsyncadd [#allocation7], 4294966784 }
 0x33e   :  { %669 = vsyncpa [#allocation6], 1 }
 0x33f   :  { %670 = vsyncpa [#allocation9], 1 }
 0x340   :  { %671 = vsyncpa [#allocation7], 1 }

</bundles_post_ra>
